<compile_context>
chip_gen: v7x
topology: tpu7x:2x2x1
jax: 0.10.0
libtpu: 0.0.40
codegen_flags: <defaults>
</compile_context>

<pallas_src>
import functools
import math

import jax
import jax.numpy as jnp
from jax import lax
from jax.experimental import pallas as pl
from jax.experimental.pallas import tpu as pltpu


def _xlogx(p):
    return float(p) * math.log(p) if p > 0.0 else 0.0


def _round_up(a, b):
    return ((a + b - 1) // b) * b


def _label_smoothing_kl_kernel(x_ref, tgt_ref, out_ref, *,
                               padding_idx, confidence, smooth_val, ent_const,
                               upcast):
    # x_ref:   (TN, V)    log-probs block (native dtype)
    # tgt_ref: (TN, 1)    int32 target ids block
    # out_ref: (1, 1, 1)  f32 partial sum for this outer super-block (resident
    #                     across the inner 'arbitrary' axis -> accumulator)
    inner = pl.program_id(1)

    @pl.when(inner == 0)
    def _init():
        out_ref[...] = jnp.zeros_like(out_ref)

    x = x_ref[...]
    if upcast:
        x = x.astype(jnp.float32)
    tgt = tgt_ref[...]                                   # (TN, 1) int32
    tn, v = x.shape

    col = lax.broadcasted_iota(jnp.int32, (tn, v), 1)

    # sum_j true_dist[r, j] * x[r, j] (non-padding rows):
    #   sv*(rowsum(x) - x[r, pad]) + (conf - sv)*x[r, tgt_r]
    rowsum = jnp.sum(x, axis=-1, keepdims=True, dtype=jnp.float32)            # (TN,1)
    tgt_x = jnp.sum(jnp.where(col == tgt, x, jnp.zeros_like(x)),
                    axis=-1, keepdims=True, dtype=jnp.float32)                # (TN,1)
    pad_x = x[:, padding_idx:padding_idx + 1].astype(jnp.float32)             # (TN,1)

    cross = smooth_val * (rowsum - pad_x) + (confidence - smooth_val) * tgt_x
    # per-row loss: (sum_j t*log t) - (sum_j t*x); padding rows contribute 0.
    row_loss = jnp.where(tgt != padding_idx, ent_const - cross, 0.0)          # (TN,1)

    out_ref[...] += jnp.sum(row_loss, dtype=jnp.float32).reshape(1, 1, 1)


def label_smoothing_kl_div_loss(x, target, *, size, padding_idx, smoothing=0.0,
                                row_tile=None):
    """Pallas TPU implementation of LabelSmoothingKLDivLoss.forward.

    x:      (N, V) float32 / bfloat16 log-probabilities, V == size
    target: (N,)   integer class indices
    returns scalar float32 loss (sum-reduced KL divergence).
    """
    N, V = x.shape
    assert V == size, "x.shape[1] must equal `size`"
    assert size > 2, "label smoothing spreads mass over size-2 classes (size > 2 required)"
    assert 0 <= padding_idx < size, "padding_idx must index a valid class column"

    confidence = 1.0 - smoothing
    smooth_val = smoothing / (size - 2)
    # sum_j t*log t for one non-padding row (xlogy(0,0) := 0 convention).
    ent_const = _xlogx(confidence) + (size - 2) * _xlogx(smooth_val)

    itemsize = jnp.dtype(x.dtype).itemsize

    try:
        dev_kind = jax.devices()[0].device_kind.lower()
    except Exception:
        dev_kind = ""
    # Keep bf16 select math in bf16 only where the VPU supports it (v6e/v7x);
    # upcast to f32 on v5e and older (no bf16 VALU) and for f32 inputs (no-op).
    keep_bf16 = (x.dtype == jnp.bfloat16) and any(t in dev_kind for t in ("v6", "v7"))
    upcast = not keep_bf16

    # VMEM budget: blocks are small (see below), so a modest scoped limit suffices
    # on every generation (64 MiB physical on v7x, 128 MiB on v5e/v6e).
    try:
        vmem_cap = int(getattr(pltpu.get_tpu_info(), "vmem_capacity_bytes",
                               64 * 1024 * 1024))
    except Exception:
        vmem_cap = 64 * 1024 * 1024
    vmem_limit = max(32 * 1024 * 1024, min(vmem_cap // 2, 64 * 1024 * 1024))

    # Byte-based block sizing (~4 MiB per x buffer): big enough to amortize the
    # ~0.35us per-grid-step overhead, small enough that the f32 cast / select /
    # iota intermediates stay bounded even on v7x's 64 MiB VMEM.
    target_block_bytes = 4 * 1024 * 1024
    if row_tile is None:
        bytes_per_row = max(1, V * itemsize)
        rows_fit = max(8, (target_block_bytes // bytes_per_row) // 8 * 8)
        half_rows = _round_up(max(1, (N + 1) // 2), 8)   # >= 2 blocks cover N
        row_tile = int(min(rows_fit, half_rows))
    row_tile = max(8, _round_up(int(row_tile), 8))

    # Pad rows to an EVEN number of tiles; padded rows carry target == padding_idx
    # so they contribute exactly zero loss and the 2-way outer split is always real.
    n_pad = _round_up(N, 2 * row_tile)
    if n_pad != N:
        x = jnp.pad(x, ((0, n_pad - N), (0, 0)))
        target = jnp.pad(target, (0, n_pad - N), constant_values=padding_idx)
    tgt2d = target.astype(jnp.int32).reshape(n_pad, 1)

    num_blocks = n_pad // row_tile
    g_outer = 2
    g_inner = num_blocks // 2

    kernel = functools.partial(
        _label_smoothing_kl_kernel,
        padding_idx=int(padding_idx),
        confidence=float(confidence),
        smooth_val=float(smooth_val),
        ent_const=float(ent_const),
        upcast=bool(upcast),
    )

    cost = pl.CostEstimate(
        flops=6 * n_pad * V,
        transcendentals=0,
        bytes_accessed=n_pad * V * itemsize + n_pad * 4 + g_outer * 4,
    )

    def _call(dim_sem):
        return pl.pallas_call(
            kernel,
            out_shape=jax.ShapeDtypeStruct((g_outer, 1, 1), jnp.float32),
            grid_spec=pltpu.PrefetchScalarGridSpec(
                num_scalar_prefetch=0,
                grid=(g_outer, g_inner),
                in_specs=[
                    pl.BlockSpec((row_tile, V), lambda o, i: (o * g_inner + i, 0)),
                    pl.BlockSpec((row_tile, 1), lambda o, i: (o * g_inner + i, 0)),
                ],
                out_specs=pl.BlockSpec((1, 1, 1), lambda o, i: (o, 0, 0)),
            ),
            compiler_params=pltpu.CompilerParams(
                dimension_semantics=dim_sem,
                vmem_limit_bytes=int(vmem_limit),
            ),
            cost_estimate=cost,
        )(x, tgt2d)

    try:
        # Real megacore split on v7x (one HBM path per TC); harmless elsewhere.
        partials = _call((pltpu.CORE_PARALLEL, pltpu.ARBITRARY))
    except Exception:
        # Platform rejected core_parallel for this grid -> plain parallel outer axis.
        partials = _call((pltpu.PARALLEL, pltpu.ARBITRARY))

    return jnp.sum(partials)


def _reference(x, target, *, size, padding_idx, smoothing):
    # Pure-JAX reference mirroring the PyTorch module.
    confidence = 1.0 - smoothing
    smooth_val = smoothing / (size - 2)
    N, V = x.shape
    xf = x.astype(jnp.float32)
    true_dist = jnp.full((N, V), smooth_val, dtype=jnp.float32)
    true_dist = true_dist.at[jnp.arange(N), target].set(confidence)
    true_dist = true_dist.at[:, padding_idx].set(0.0)
    true_dist = jnp.where((target == padding_idx)[:, None], 0.0, true_dist)
    safe_t = jnp.where(true_dist > 0, true_dist, 1.0)
    return jnp.sum(jnp.where(true_dist > 0,
                             true_dist * (jnp.log(safe_t) - xf),
                             0.0))


if __name__ == "__main__":
    key = jax.random.PRNGKey(0)
    padding_idx = 0
    smoothing = 0.1
    V = 32  # vocab size (== `size`)

    k1, k2, k3, k4 = jax.random.split(key, 4)

    # Case 1: small flattened (batch*seq) rows, auto tile.
    N1 = 16
    x1 = jax.nn.log_softmax(jax.random.normal(k1, (N1, V), dtype=jnp.float32), axis=-1)
    tgt1 = jax.random.randint(k2, (N1,), 0, V, dtype=jnp.int32)
    tgt1 = tgt1.at[3].set(padding_idx).at[10].set(padding_idx)
    loss1 = jax.block_until_ready(label_smoothing_kl_div_loss(
        x1, tgt1, size=V, padding_idx=padding_idx, smoothing=smoothing))
    ref1 = _reference(x1, tgt1, size=V, padding_idx=padding_idx, smoothing=smoothing)
    assert jnp.allclose(loss1, ref1, rtol=1e-4, atol=1e-4), (loss1, ref1)

    # Case 2: N not a multiple of the tile (row padding + multi-block inner axis).
    N2 = 50
    x2 = jax.nn.log_softmax(jax.random.normal(k3, (N2, V), dtype=jnp.float32), axis=-1)
    tgt2 = jax.random.randint(k4, (N2,), 0, V, dtype=jnp.int32)
    tgt2 = tgt2.at[0].set(padding_idx).at[17].set(padding_idx)
    loss2 = jax.block_until_ready(label_smoothing_kl_div_loss(
        x2, tgt2, size=V, padding_idx=padding_idx, smoothing=smoothing, row_tile=8))
    ref2 = _reference(x2, tgt2, size=V, padding_idx=padding_idx, smoothing=smoothing)
    assert jnp.allclose(loss2, ref2, rtol=1e-4, atol=1e-4), (loss2, ref2)

    # Case 3: even number of blocks, explicit small tile (2-way outer split, deep inner).
    N3 = 64
    x3 = jax.nn.log_softmax(jax.random.normal(k2, (N3, V), dtype=jnp.float32), axis=-1)
    tgt3 = jax.random.randint(k1, (N3,), 0, V, dtype=jnp.int32).at[5].set(padding_idx)
    loss3 = jax.block_until_ready(label_smoothing_kl_div_loss(
        x3, tgt3, size=V, padding_idx=padding_idx, smoothing=smoothing, row_tile=8))
    ref3 = _reference(x3, tgt3, size=V, padding_idx=padding_idx, smoothing=smoothing)
    assert jnp.allclose(loss3, ref3, rtol=1e-4, atol=1e-4), (loss3, ref3)

    # Case 4: bf16 log-probs (exercises the reduced-precision select path on v6e/v7x,
    # the f32-upcast path elsewhere). Relaxed tolerance for bf16 inputs.
    N4 = 48
    x4 = jax.nn.log_softmax(jax.random.normal(k4, (N4, V), dtype=jnp.float32),
                            axis=-1).astype(jnp.bfloat16)
    tgt4 = jax.random.randint(k3, (N4,), 0, V, dtype=jnp.int32).at[7].set(padding_idx)
    loss4 = jax.block_until_ready(label_smoothing_kl_div_loss(
        x4, tgt4, size=V, padding_idx=padding_idx, smoothing=smoothing))
    ref4 = _reference(x4, tgt4, size=V, padding_idx=padding_idx, smoothing=smoothing)
    assert jnp.allclose(loss4, ref4, rtol=2e-2, atol=0.5), (loss4, ref4)

    print("KERNEL_OK")
</pallas_src>

<mosaic_0001>
module attributes {stable_mosaic.version = 11 : i64} {
  func.func @_label_smoothing_kl_kernel(%arg0: i32, %arg1: i32, %arg2: memref<8x32xf32, #tpu.memory_space<vmem>>, %arg3: memref<8x1xi32, #tpu.memory_space<vmem>>, %arg4: memref<1x1x1xf32, #tpu.memory_space<vmem>>) attributes {dimension_semantics = [#tpu.dimension_semantics<core_parallel>, #tpu.dimension_semantics<arbitrary>], iteration_bounds = array<i64: 2, 1>, scalar_prefetch = 0 : i64, scratch_operands = 0 : i64, tpu.core_type = #tpu.core_type<tc>, window_params = [{transform_indices = @transform_0, window_bounds = array<i64: 8, 32>}, {transform_indices = @transform_1, window_bounds = array<i64: 8, 1>}, {transform_indices = @transform_2, window_bounds = array<i64: 1, 1, 1>}]} {
    %c0_i32 = arith.constant 0 : i32
    %0 = arith.cmpi eq, %arg1, %c0_i32 : i32
    %1 = arith.extui %0 : i1 to i32
    %c0_i32_0 = arith.constant 0 : i32
    %2 = arith.cmpi ne, %1, %c0_i32_0 : i32
    scf.if %2 {
      %cst_18 = arith.constant 0.000000e+00 : f32
      %35 = vector.broadcast %cst_18 : f32 to vector<1x1x1xf32>
      %c0_19 = arith.constant 0 : index
      %c0_20 = arith.constant 0 : index
      %c0_21 = arith.constant 0 : index
      %36 = vector.load %arg4[%c0_19, %c0_20, %c0_21] : memref<1x1x1xf32, #tpu.memory_space<vmem>>, vector<1x1x1xf32>
      tpu.vector_store %arg4[%c0_19, %c0_20, %c0_21], %35 {strides = array<i32>} : memref<1x1x1xf32, #tpu.memory_space<vmem>>, vector<1x1x1xf32>,
    } else {
    }
    %c0 = arith.constant 0 : index
    %c0_1 = arith.constant 0 : index
    %3 = vector.load %arg2[%c0, %c0_1] : memref<8x32xf32, #tpu.memory_space<vmem>>, vector<8x32xf32>
    %c0_2 = arith.constant 0 : index
    %c0_3 = arith.constant 0 : index
    %4 = vector.load %arg3[%c0_2, %c0_3] : memref<8x1xi32, #tpu.memory_space<vmem>>, vector<8x1xi32>
    %5 = tpu.iota {dimensions = array<i32: 1>} : vector<8x32xi32>
    %cst = arith.constant dense<0.000000e+00> : vector<8xf32>
    %6 = vector.multi_reduction <add>, %3, %cst [1] : vector<8x32xf32> to vector<8xf32>
    %7 = vector.shape_cast %6 : vector<8xf32> to vector<8x1xf32>
    %8 = vector.broadcast %4 : vector<8x1xi32> to vector<8x32xi32>
    %9 = arith.cmpi eq, %5, %8 : vector<8x32xi32>
    %cst_4 = arith.constant 0.000000e+00 : f32
    %10 = vector.broadcast %cst_4 : f32 to vector<8x32xf32>
    %11 = arith.select %9, %3, %10 : vector<8x32xi1>, vector<8x32xf32>
    %cst_5 = arith.constant dense<0.000000e+00> : vector<8xf32>
    %12 = vector.multi_reduction <add>, %11, %cst_5 [1] : vector<8x32xf32> to vector<8xf32>
    %13 = vector.shape_cast %12 : vector<8xf32> to vector<8x1xf32>
    %14 = vector.extract_strided_slice %3 {offsets = [0, 0], sizes = [8, 1], strides = [1, 1]} : vector<8x32xf32> to vector<8x1xf32>
    %15 = arith.subf %7, %14 : vector<8x1xf32>
    %cst_6 = arith.constant 0.00333333341 : f32
    %16 = vector.broadcast %cst_6 : f32 to vector<8x1xf32>
    %17 = arith.mulf %16, %15 : vector<8x1xf32>
    %cst_7 = arith.constant 0.896666646 : f32
    %18 = vector.broadcast %cst_7 : f32 to vector<8x1xf32>
    %19 = arith.mulf %18, %13 : vector<8x1xf32>
    %20 = arith.addf %17, %19 : vector<8x1xf32>
    %c0_i32_8 = arith.constant 0 : i32
    %21 = vector.broadcast %c0_i32_8 : i32 to vector<8x1xi32>
    %22 = arith.cmpi ne, %4, %21 : vector<8x1xi32>
    %cst_9 = arith.constant -0.665202737 : f32
    %23 = vector.broadcast %cst_9 : f32 to vector<8x1xf32>
    %24 = arith.subf %23, %20 : vector<8x1xf32>
    %cst_10 = arith.constant 0.000000e+00 : f32
    %25 = vector.broadcast %cst_10 : f32 to vector<8x1xf32>
    %26 = arith.select %22, %24, %25 : vector<8x1xi1>, vector<8x1xf32>
    %c0_11 = arith.constant 0 : index
    %c0_12 = arith.constant 0 : index
    %c0_13 = arith.constant 0 : index
    %27 = vector.load %arg4[%c0_11, %c0_12, %c0_13] : memref<1x1x1xf32, #tpu.memory_space<vmem>>, vector<1x1x1xf32>
    %28 = vector.shape_cast %26 : vector<8x1xf32> to vector<1x8x1xf32>
    %cst_14 = arith.constant dense<0.000000e+00> : vector<1xf32>
    %29 = vector.multi_reduction <add>, %28, %cst_14 [1, 2] : vector<1x8x1xf32> to vector<1xf32>
    %30 = vector.shape_cast %29 : vector<1xf32> to vector<1x1x1xf32>
    %31 = vector.extract %30[0, 0, 0] : f32 from vector<1x1x1xf32>
    %32 = vector.broadcast %31 : f32 to vector<1x1x1xf32>
    %33 = arith.addf %27, %32 : vector<1x1x1xf32>
    %c0_15 = arith.constant 0 : index
    %c0_16 = arith.constant 0 : index
    %c0_17 = arith.constant 0 : index
    %34 = vector.load %arg4[%c0_15, %c0_16, %c0_17] : memref<1x1x1xf32, #tpu.memory_space<vmem>>, vector<1x1x1xf32>
    tpu.vector_store %arg4[%c0_15, %c0_16, %c0_17], %33 {strides = array<i32>} : memref<1x1x1xf32, #tpu.memory_space<vmem>>, vector<1x1x1xf32>,
    return
  }
  func.func @transform_0(%arg0: i32, %arg1: i32) -> (i32, i32) {
    %c1_i32 = arith.constant 1 : i32
    %0 = arith.muli %arg0, %c1_i32 : i32
    %1 = arith.addi %0, %arg1 : i32
    %c0_i32 = arith.constant 0 : i32
    %c0_i32_0 = arith.constant 0 : i32
    return %1, %c0_i32 : i32, i32
  }
  func.func @transform_1(%arg0: i32, %arg1: i32) -> (i32, i32) {
    %c1_i32 = arith.constant 1 : i32
    %0 = arith.muli %arg0, %c1_i32 : i32
    %1 = arith.addi %0, %arg1 : i32
    %c0_i32 = arith.constant 0 : i32
    %c0_i32_0 = arith.constant 0 : i32
    return %1, %c0_i32 : i32, i32
  }
  func.func @transform_2(%arg0: i32, %arg1: i32) -> (i32, i32, i32) {
    %c0_i32 = arith.constant 0 : i32
    %c0_i32_0 = arith.constant 0 : i32
    %c0_i32_1 = arith.constant 0 : i32
    return %arg0, %c0_i32, %c0_i32_0 : i32, i32, i32
  }
}

module attributes {stable_mosaic.version = 11 : i64} {
  func.func @_label_smoothing_kl_kernel(%arg0: i32, %arg1: i32, %arg2: memref<8x32xf32, #tpu.memory_space<vmem>>, %arg3: memref<8x1xi32, #tpu.memory_space<vmem>>, %arg4: memref<1x1x1xf32, #tpu.memory_space<vmem>>) attributes {dimension_semantics = [#tpu.dimension_semantics<parallel>, #tpu.dimension_semantics<arbitrary>], iteration_bounds = array<i64: 2, 1>, scalar_prefetch = 0 : i64, scratch_operands = 0 : i64, tpu.core_type = #tpu.core_type<tc>, window_params = [{transform_indices = @transform_0, window_bounds = array<i64: 8, 32>}, {transform_indices = @transform_1, window_bounds = array<i64: 8, 1>}, {transform_indices = @transform_2, window_bounds = array<i64: 1, 1, 1>}]} {
    %c0_i32 = arith.constant 0 : i32
    %0 = arith.cmpi eq, %arg1, %c0_i32 : i32
    %1 = arith.extui %0 : i1 to i32
    %c0_i32_0 = arith.constant 0 : i32
    %2 = arith.cmpi ne, %1, %c0_i32_0 : i32
    scf.if %2 {
      %cst_18 = arith.constant 0.000000e+00 : f32
      %35 = vector.broadcast %cst_18 : f32 to vector<1x1x1xf32>
      %c0_19 = arith.constant 0 : index
      %c0_20 = arith.constant 0 : index
      %c0_21 = arith.constant 0 : index
      %36 = vector.load %arg4[%c0_19, %c0_20, %c0_21] : memref<1x1x1xf32, #tpu.memory_space<vmem>>, vector<1x1x1xf32>
      tpu.vector_store %arg4[%c0_19, %c0_20, %c0_21], %35 {strides = array<i32>} : memref<1x1x1xf32, #tpu.memory_space<vmem>>, vector<1x1x1xf32>,
    } else {
    }
    %c0 = arith.constant 0 : index
    %c0_1 = arith.constant 0 : index
    %3 = vector.load %arg2[%c0, %c0_1] : memref<8x32xf32, #tpu.memory_space<vmem>>, vector<8x32xf32>
    %c0_2 = arith.constant 0 : index
    %c0_3 = arith.constant 0 : index
    %4 = vector.load %arg3[%c0_2, %c0_3] : memref<8x1xi32, #tpu.memory_space<vmem>>, vector<8x1xi32>
    %5 = tpu.iota {dimensions = array<i32: 1>} : vector<8x32xi32>
    %cst = arith.constant dense<0.000000e+00> : vector<8xf32>
    %6 = vector.multi_reduction <add>, %3, %cst [1] : vector<8x32xf32> to vector<8xf32>
    %7 = vector.shape_cast %6 : vector<8xf32> to vector<8x1xf32>
    %8 = vector.broadcast %4 : vector<8x1xi32> to vector<8x32xi32>
    %9 = arith.cmpi eq, %5, %8 : vector<8x32xi32>
    %cst_4 = arith.constant 0.000000e+00 : f32
    %10 = vector.broadcast %cst_4 : f32 to vector<8x32xf32>
    %11 = arith.select %9, %3, %10 : vector<8x32xi1>, vector<8x32xf32>
    %cst_5 = arith.constant dense<0.000000e+00> : vector<8xf32>
    %12 = vector.multi_reduction <add>, %11, %cst_5 [1] : vector<8x32xf32> to vector<8xf32>
    %13 = vector.shape_cast %12 : vector<8xf32> to vector<8x1xf32>
    %14 = vector.extract_strided_slice %3 {offsets = [0, 0], sizes = [8, 1], strides = [1, 1]} : vector<8x32xf32> to vector<8x1xf32>
    %15 = arith.subf %7, %14 : vector<8x1xf32>
    %cst_6 = arith.constant 0.00333333341 : f32
    %16 = vector.broadcast %cst_6 : f32 to vector<8x1xf32>
    %17 = arith.mulf %16, %15 : vector<8x1xf32>
    %cst_7 = arith.constant 0.896666646 : f32
    %18 = vector.broadcast %cst_7 : f32 to vector<8x1xf32>
    %19 = arith.mulf %18, %13 : vector<8x1xf32>
    %20 = arith.addf %17, %19 : vector<8x1xf32>
    %c0_i32_8 = arith.constant 0 : i32
    %21 = vector.broadcast %c0_i32_8 : i32 to vector<8x1xi32>
    %22 = arith.cmpi ne, %4, %21 : vector<8x1xi32>
    %cst_9 = arith.constant -0.665202737 : f32
    %23 = vector.broadcast %cst_9 : f32 to vector<8x1xf32>
    %24 = arith.subf %23, %20 : vector<8x1xf32>
    %cst_10 = arith.constant 0.000000e+00 : f32
    %25 = vector.broadcast %cst_10 : f32 to vector<8x1xf32>
    %26 = arith.select %22, %24, %25 : vector<8x1xi1>, vector<8x1xf32>
    %c0_11 = arith.constant 0 : index
    %c0_12 = arith.constant 0 : index
    %c0_13 = arith.constant 0 : index
    %27 = vector.load %arg4[%c0_11, %c0_12, %c0_13] : memref<1x1x1xf32, #tpu.memory_space<vmem>>, vector<1x1x1xf32>
    %28 = vector.shape_cast %26 : vector<8x1xf32> to vector<1x8x1xf32>
    %cst_14 = arith.constant dense<0.000000e+00> : vector<1xf32>
    %29 = vector.multi_reduction <add>, %28, %cst_14 [1, 2] : vector<1x8x1xf32> to vector<1xf32>
    %30 = vector.shape_cast %29 : vector<1xf32> to vector<1x1x1xf32>
    %31 = vector.extract %30[0, 0, 0] : f32 from vector<1x1x1xf32>
    %32 = vector.broadcast %31 : f32 to vector<1x1x1xf32>
    %33 = arith.addf %27, %32 : vector<1x1x1xf32>
    %c0_15 = arith.constant 0 : index
    %c0_16 = arith.constant 0 : index
    %c0_17 = arith.constant 0 : index
    %34 = vector.load %arg4[%c0_15, %c0_16, %c0_17] : memref<1x1x1xf32, #tpu.memory_space<vmem>>, vector<1x1x1xf32>
    tpu.vector_store %arg4[%c0_15, %c0_16, %c0_17], %33 {strides = array<i32>} : memref<1x1x1xf32, #tpu.memory_space<vmem>>, vector<1x1x1xf32>,
    return
  }
  func.func @transform_0(%arg0: i32, %arg1: i32) -> (i32, i32) {
    %c1_i32 = arith.constant 1 : i32
    %0 = arith.muli %arg0, %c1_i32 : i32
    %1 = arith.addi %0, %arg1 : i32
    %c0_i32 = arith.constant 0 : i32
    %c0_i32_0 = arith.constant 0 : i32
    return %1, %c0_i32 : i32, i32
  }
  func.func @transform_1(%arg0: i32, %arg1: i32) -> (i32, i32) {
    %c1_i32 = arith.constant 1 : i32
    %0 = arith.muli %arg0, %c1_i32 : i32
    %1 = arith.addi %0, %arg1 : i32
    %c0_i32 = arith.constant 0 : i32
    %c0_i32_0 = arith.constant 0 : i32
    return %1, %c0_i32 : i32, i32
  }
  func.func @transform_2(%arg0: i32, %arg1: i32) -> (i32, i32, i32) {
    %c0_i32 = arith.constant 0 : i32
    %c0_i32_0 = arith.constant 0 : i32
    %c0_i32_1 = arith.constant 0 : i32
    return %arg0, %c0_i32, %c0_i32_0 : i32, i32, i32
  }
}

</mosaic_0001>

<bundles_post_ra>
// kernel: tpu_custom_call.1
= control target key start
LH: loop header
LB: loop body
LE: loop exit
PB: predicated region body
PF: predicated region fallthrough
CT: control target
= control target key end

     0   :  { %s371_s9 = smov 0   ;;  %s373_s10 = smov 0   ;;  %s411_s0 = inlined_call_operand.vmem [shape: f32[16,32], index: 0, kind: input, shape index: {}]   ;;  %s412_s1 = inlined_call_operand.vmem [shape: s32[16,1], index: 1, kind: input, shape index: {}]   ;;  %s413_s2 = inlined_call_operand.vmem [shape: f32[2,1,1], index: 2, kind: output, shape index: {}]  }
   0x1   :  { %s375_s11 = smov 0  }
   0x2 LB: > { %s24_s12 = sadd.s32 1, %s348_s10  ;;  %p296_p0 = scmp.ge.s32.totalorder %s352_s11, 1  ;;  %s352_s11 = sphi %s375_s11, %s12_s11   ;;  %s348_s10 = sphi %s373_s10, %s415_s10   ;;  %s344_s9 = sphi %s371_s9, %s414_s9  }
   0x3   : > { %p26_p1 = scmp.ge.s32.totalorder %s24_s12, 2  ;;  %p140_p2 = scmp.lt.s32.totalorder %s352_s11, 3 }
   0x5   : > { %s417_s12 = smov (%p26_p1, %s24_s12), 0  ;;  %p141_p3 = pnand %p296_p0, %p140_p2 }
   0x6   : > { %p166_p4 = scmp.lt.s32.totalorder (!%p141_p3), %s344_s9, 1  ;;  %v354_v0 = vmov (!%p141_p3), 0   ;;  %vm190_vm0 = vcmask (!%p141_p3), 261120   ;;  %v188_v4 = vlaneseq (!%p141_p3)  ;;  %vm210_vm3 = vcmask (!%p141_p3), 7168  }
   0x7   : > { %144 = sbr.rel (%p141_p3) target bundleno = 507 (0x1fb), region = 28  ;;  %329 = vset.pattern.permute.xlu0 (!%p141_p3), %v354_v0  ;;  %vm184_vm4 = vcmask (!%p141_p3), 0   ;;  %v355_v18 = vmov (!%p141_p3), 0.0  }
   0x8   : > { %v189_v5 = vand.u32 (!%p141_p3), 127, %v188_v4 }
   0xe   : > { %s419_s9 = smov (!%p166_p4, %s344_s9), 1 }
   0xf   : > { %s297_s13 = sshll.u32 %s419_s9, 3  ;;  %s179_s22 = scalar_lea.vmem %s413_s2, %s419_s9 }
  0x10   : > { %s175_s16 = scalar_lea.vmem %s412_s1, %s297_s13  ;;  %s169_s19 = scalar_lea.vmem %s411_s0, %s297_s13  ;;  %185 = vst.msk [vmem:[%s179_s22] sm:$0x1] %vm184_vm4, %v355_v18 }
  0x11   : > { %v187_v1 = vld [vmem:[%s175_s16] sm:$0xff] }
  0x12   : > { %195 = vperm.xlu0 %329, %v187_v1   ;;  %v186_v2 = vld [vmem:[%s169_s19] sm:$0xff]  ;;  %vm206_vm2 = vcmp.ne.s32.totalorder %v187_v1, 0 }
  0x13   : > { %v191_v3 = vsel %vm190_vm0, %v186_v2, 0.0 }
  0x17   : > { %v209_v26 = vld [vmem:[%s179_s22] sm:$0x1] }
  0x31   : > { %192 = vadd.xlane.f32.xlu0 %v191_v3 }
  0x91   : > { %v196_v6 = vpop.permute.xlu0 %195 }
  0x92   : > { %vm197_vm1 = vcmp.eq.s32.totalorder %v189_v5, %v196_v6 }
  0x93   : > { %v198_v7 = vsel %vm197_vm1, %v186_v2, 0.0 }
  0x94   : > { %v199_v8 = vsel %vm190_vm0, %v198_v7, 0.0 }
  0x95   : > { %200 = vadd.xlane.f32.xlu1 %v199_v8 }
  0xbe   : > { %v193_v9 = vpop.xlane.xlu0 %192 }
  0xbf   : > { %v202_v10 = vsub.f32 %v193_v9, %v186_v2 }
  0xc1   : > { %v203_v11 = vmul.f32 0.0033333334, %v202_v10 }
 0x122   : > { %v201_v12 = vpop.xlane.xlu1 %200 }
 0x123   : > { %v204_v13 = vmul.f32 0.89666665, %v201_v12 }
 0x125   : > { %v205_v14 = vadd.f32 %v204_v13, %v203_v11 }
 0x127   : > { %v207_v15 = vsub.f32 -0.66520274, %v205_v14 }
 0x129   : > { %v208_v16 = vsel %vm206_vm2, %v207_v15, 0.0 }
 0x12a   : > { %v211_v17 = vsel %vm210_vm3, %v208_v16, 0.0 }
 0x12b   : > { %212 = vadd.xlane.f32.xlu1 %v211_v17 }
 0x1b8   : > { %v213_v19 = vpop.xlane.xlu1 %212 }
 0x1b9   : > { %v214_v20 = vrot.slane %v213_v19, 4 }
 0x1bb   : > { %v215_v21 = vadd.f32 %v214_v20, %v213_v19 }
 0x1bd   : > { %v216_v22 = vrot.slane %v215_v21, 2 }
 0x1bf   : > { %v217_v23 = vadd.f32 %v216_v22, %v215_v21 }
 0x1c1   : > { %v218_v24 = vrot.slane %v217_v23, 1 }
 0x1c3   : > { %v219_v25 = vadd.f32 %v218_v24, %v217_v23 }
 0x1c5   : > { %301 = vpush %v219_v25 }
 0x1f6   : > { %s302_s23 = spop %301 }
 0x1f7   : > { %v221_v27 = vstv %s302_s23 }
 0x1f8   : > { %v222_v28 = vadd.f32 %v221_v27, %v209_v26 }
 0x1fa   : > { %224 = vst.msk [vmem:[%s179_s22] sm:$0x1] %vm184_vm4, %v222_v28 }
 0x1fb PF: > { %s12_s11 = sadd.s32 1, %s352_s11   ;;  %s414_s9 = smov %s348_s10 }
 0x1fc   : > { %p9_p5 = scmp.ge.s32.totalorder %s12_s11, 4   ;;  %s415_s10 = smov %s417_s12 }
 0x1fe   :  { %11 = sbr.rel (!%p9_p5) target bundleno = 2 (0x2), region = 65 }

</bundles_post_ra>
